<compile_context>
chip_gen: v7x
topology: tpu7x:2x2x1
jax: 0.10.0
libtpu: 0.0.40
codegen_flags: <defaults>
</compile_context>

<pallas_src>
import functools
import math

import jax
import jax.numpy as jnp
from jax.experimental import pallas as pl
from jax.experimental.pallas import tpu as pltpu

_LANE = 128
# ~1 MiB per block -> 2 input bufs + 2 output bufs = ~4 MiB of VMEM,
# comfortably under the scoped-VMEM defaults on v5e (16 MiB), v6e (32 MiB)
# and v7x (32 MiB of 64 MiB physical), while large enough to reach ~85% of
# the HBM roofline (measured sweet spot for pure memcpy tiles).
_TARGET_BLOCK_BYTES = 1 << 20


def _copy_kernel(x_ref, o_ref):
    # Identity copy of the current tile (the reshape "hot path").
    o_ref[...] = x_ref[...]


def _resolve_shape(target_shape, total):
    shape = list(target_shape)
    if -1 in shape:
        idx = shape.index(-1)
        known = 1
        for i, s in enumerate(shape):
            if i != idx:
                known *= s
        assert known != 0 and total % known == 0, "cannot infer -1 dimension"
        shape[idx] = total // known
    assert math.prod(shape) == total, "reshape size mismatch"
    return tuple(shape)


@functools.partial(jax.jit, static_argnames=("target_shape",))
def pallas_reshape(x, target_shape):
    total = x.size
    shape = _resolve_shape(target_shape, total)

    if total == 0:
        return jnp.reshape(x, shape)

    itemsize = jnp.dtype(x.dtype).itemsize
    # Native sublane tile: 8 rows for 4-byte, 16 for 2-byte, 32 for 1-byte
    # dtypes (sub-32-bit dtypes pack along sublanes).
    min_rows = max(8, 32 // max(itemsize, 1))

    # Lane-dense 2D view of the flat row-major buffer.  Ragged totals (not a
    # multiple of 128) are padded up to a lane multiple and sliced back after
    # the copy; this keeps the kernel path uniform and VMEM-safe at any size.
    flat = x.reshape(-1)
    pad = (-total) % _LANE
    if pad:
        flat = jnp.pad(flat, (0, pad))
    padded_total = total + pad
    rows = padded_total // _LANE
    x2d = flat.reshape(rows, _LANE)

    # Dtype-aware block: ~1 MiB, rows a multiple of the native sublane tile.
    rows_per_block = max(
        min_rows,
        (_TARGET_BLOCK_BYTES // (_LANE * itemsize)) // min_rows * min_rows,
    )

    if rows <= rows_per_block:
        # Small input: one full-extent block (always a legal block shape).
        block_rows = rows
        grid = (1,)
    else:
        # Large input: cdiv-tiled grid; Pallas masks the trailing partial
        # block.  Multi-step "parallel" grid lets v7x shard across both TCs.
        block_rows = rows_per_block
        grid = (pl.cdiv(rows, block_rows),)

    out2d = pl.pallas_call(
        _copy_kernel,
        out_shape=jax.ShapeDtypeStruct((rows, _LANE), x.dtype),
        grid_spec=pltpu.PrefetchScalarGridSpec(
            num_scalar_prefetch=0,
            grid=grid,
            in_specs=[pl.BlockSpec((block_rows, _LANE), lambda i: (i, 0))],
            out_specs=pl.BlockSpec((block_rows, _LANE), lambda i: (i, 0)),
        ),
        compiler_params=pltpu.CompilerParams(
            dimension_semantics=("parallel",),
        ),
        cost_estimate=pl.CostEstimate(
            flops=0,
            transcendentals=0,
            bytes_accessed=2 * padded_total * itemsize,
        ),
    )(x2d)

    out_flat = out2d.reshape(-1)
    if pad:
        out_flat = out_flat[:total]
    # Shape re-interpretation (pure metadata) stays in plain JAX.
    return out_flat.reshape(shape)


class Reshape:
    """JAX/Pallas equivalent of the PyTorch Reshape module."""

    def __init__(self, *args):
        self.shape = tuple(args)

    def __call__(self, x):
        return pallas_reshape(x, self.shape)


if __name__ == "__main__":
    key = jax.random.PRNGKey(0)

    # Spec-sized input: batch=2, channels=4, spatial=16x16 (NCHW).
    x = jax.random.normal(key, (2, 4, 16, 16), dtype=jnp.float32)
    module = Reshape(2, -1)  # -> (2, 1024)
    y = jax.block_until_ready(module(x))
    ref = x.reshape(2, -1)
    assert y.shape == ref.shape, (y.shape, ref.shape)
    assert y.dtype == ref.dtype
    assert bool(jnp.array_equal(y, ref))

    # Multi-block tiled path (rows > rows_per_block), f32.
    x2 = jax.random.normal(key, (8, 16, 64, 64), dtype=jnp.float32)
    y2 = jax.block_until_ready(Reshape(8, -1)(x2))
    assert bool(jnp.array_equal(y2, x2.reshape(8, -1)))

    # Packed dtype (bf16) exercises the dtype-aware sublane tiling.
    x3 = jax.random.normal(key, (2, 4, 16, 16), dtype=jnp.bfloat16)
    y3 = jax.block_until_ready(Reshape(4, -1)(x3))
    assert bool(jnp.array_equal(y3, x3.reshape(4, -1)))

    # Ragged total (not a multiple of 128) exercises the pad/slice path.
    x4 = jax.random.normal(key, (3, 5, 7), dtype=jnp.float32)
    y4 = jax.block_until_ready(Reshape(-1)(x4))
    assert bool(jnp.array_equal(y4, x4.reshape(-1)))

    print("KERNEL_OK")
</pallas_src>

<mosaic_0001>
module attributes {stable_mosaic.version = 11 : i64} {
  func.func @_copy_kernel(%arg0: i32, %arg1: memref<16x128xf32, #tpu.memory_space<vmem>>, %arg2: memref<16x128xf32, #tpu.memory_space<vmem>>) attributes {dimension_semantics = [#tpu.dimension_semantics<parallel>], iteration_bounds = array<i64: 1>, scalar_prefetch = 0 : i64, scratch_operands = 0 : i64, tpu.core_type = #tpu.core_type<tc>, window_params = [{transform_indices = @transform_0, window_bounds = array<i64: 16, 128>}, {transform_indices = @transform_1, window_bounds = array<i64: 16, 128>}]} {
    %c0 = arith.constant 0 : index
    %c0_0 = arith.constant 0 : index
    %0 = vector.load %arg1[%c0, %c0_0] : memref<16x128xf32, #tpu.memory_space<vmem>>, vector<16x128xf32>
    %c0_1 = arith.constant 0 : index
    %c0_2 = arith.constant 0 : index
    %1 = vector.load %arg2[%c0_1, %c0_2] : memref<16x128xf32, #tpu.memory_space<vmem>>, vector<16x128xf32>
    tpu.vector_store %arg2[%c0_1, %c0_2], %0 {strides = array<i32>} : memref<16x128xf32, #tpu.memory_space<vmem>>, vector<16x128xf32>,
    return
  }
  func.func @transform_0(%arg0: i32) -> (i32, i32) {
    %c0_i32 = arith.constant 0 : i32
    %c0_i32_0 = arith.constant 0 : i32
    return %arg0, %c0_i32 : i32, i32
  }
  func.func @transform_1(%arg0: i32) -> (i32, i32) {
    %c0_i32 = arith.constant 0 : i32
    %c0_i32_0 = arith.constant 0 : i32
    return %arg0, %c0_i32 : i32, i32
  }
}

</mosaic_0001>

<bundles_post_ra>
// kernel: pallas_reshape.1
= control target key start
LH: loop header
LB: loop body
LE: loop exit
PB: predicated region body
PF: predicated region fallthrough
CT: control target
= control target key end

     0   :  { %s38_s0 = inlined_call_operand.vmem [shape: f32[16,128], index: 0, kind: input, shape index: {}]   ;;  %s39_s1 = inlined_call_operand.vmem [shape: f32[16,128], index: 1, kind: output, shape index: {}]  }
   0x1   :  { %v8_v0 = vld [vmem:[%s38_s0] sm:$0xff]  ;;  %v9_v1 = vld [vmem:[%s38_s0 + $0x8] sm:$0xff] }
   0x2   :  { %10 = vst [vmem:[%s39_s1] sm:$0xff] %v8_v0  ;;  %11 = vst [vmem:[%s39_s1 + $0x8] sm:$0xff] %v9_v1 }

</bundles_post_ra>
